<compile_context>
chip_gen: v7x
topology: tpu7x:2x2x1
jax: 0.10.0
libtpu: 0.0.40
codegen_flags: <defaults>
</compile_context>

<pallas_src>
import functools

import jax
import jax.numpy as jnp
import numpy as np
from jax.experimental import pallas as pl
from jax.experimental.pallas import tpu as pltpu


def _round_up(x, m):
    return (x + m - 1) // m * m


def _sdpa_kernel(*refs, temperature, has_mask):
    if has_mask:
        q_ref, k_ref, v_ref, mask_ref, out_ref, attn_ref = refs
    else:
        q_ref, k_ref, v_ref, out_ref, attn_ref = refs

    d_k, Bb = q_ref.shape          # (d_k, Bb)   B lane-dense
    T = attn_ref.shape[0]          # attn block: (T, Bb)
    d_v = out_ref.shape[0]         # out block:  (d_v, Bb)

    # Fold 1/temperature into q once per block (d_k*Bb muls, not T*Bb).
    qs = q_ref[...].astype(jnp.float32) * jnp.float32(1.0 / temperature)   # (d_k, Bb)

    # scores[t, b] = sum_d qs[d, b] * k[d, t, b]
    # Accumulate over the leading d_k axis: pure VALU mul/add across (T, Bb)
    # slabs; only a (T, Bb) accumulator stays live (no (d_k,T,Bb) intermediate).
    scores = jnp.zeros((T, Bb), jnp.float32)
    for d in range(d_k):
        scores = scores + qs[d : d + 1, :] * k_ref[d].astype(jnp.float32)

    if has_mask:
        # torch: attn.masked_fill(mask.bool(), 1e-9)  (pre-softmax fill, NOT -inf)
        scores = jnp.where(mask_ref[...] != 0, jnp.float32(1e-9), scores)

    # softmax over the seq axis (torch dim=2); T is the sublane axis here, so
    # these are cheap dense sublane reduces.
    m = jnp.max(scores, axis=0, keepdims=True)            # (1, Bb)
    e = jnp.exp(scores - m)                                # (T, Bb)  EUP
    denom = jnp.sum(e, axis=0, keepdims=True)              # (1, Bb)
    attn = e * pl.reciprocal(denom)                        # exact: rows sum to 1
    attn_ref[...] = attn.astype(attn_ref.dtype)

    # TODO(synk): nn.Dropout(0.1) — eval-mode identity; training-mode stochastic
    # dropout is not reproduced here.

    # out[dv, b] = sum_t attn[t, b] * v[t, dv, b]  (accumulated over T, VALU adds)
    out = jnp.zeros((d_v, Bb), jnp.float32)
    for t in range(T):
        out = out + attn[t : t + 1, :] * v_ref[t].astype(jnp.float32)
    out_ref[...] = out.astype(out_ref.dtype)


def scaled_dot_product_attention(q, k, v, temperature, mask=None, block_b=1024):
    """Pallas implementation of LTAE ScaledDotProductAttention.forward."""
    B, d_k = q.shape
    _, T, _ = k.shape
    d_v = v.shape[-1]
    has_mask = mask is not None
    attn_dtype = q.dtype

    # ---- lane-dense layout: B goes last everywhere (layout plumbing only) ----
    qT = jnp.transpose(q, (1, 0))        # (d_k, B)
    kT = jnp.transpose(k, (2, 1, 0))     # (d_k, T, B)
    vT = jnp.transpose(v, (1, 2, 0))     # (T, d_v, B)

    # Batch tile on the lane axis: multiple of 128, capped at block_b.
    Bb = min(_round_up(block_b, 128), _round_up(B, 128))

    _MiB = 1024 * 1024

    def _vmem_need_bytes(bb):
        # Pipeline blocks (inputs + outputs), double-buffered, plus f32 temporaries.
        blk = (d_k * bb * q.dtype.itemsize            # q block
               + d_k * T * bb * k.dtype.itemsize      # k block
               + T * d_v * bb * v.dtype.itemsize      # v block
               + d_v * bb * q.dtype.itemsize          # out block
               + T * bb * q.dtype.itemsize)           # attn block
        if has_mask:
            blk += T * bb                             # int8 mask block
        temps = 4 * bb * (3 * T + d_v + d_k)          # scores/exp/attn, out acc, scaled q
        return 2 * blk + temps

    # Shrink the tile until the double-buffered pipeline comfortably fits VMEM
    # on every generation (v7x has only 64 MiB physical).
    while Bb > 128 and _vmem_need_bytes(Bb) > 36 * _MiB:
        Bb = max(128, _round_up(Bb // 2, 128))
    vmem_limit = int(min(44 * _MiB, max(32 * _MiB, 1.2 * _vmem_need_bytes(Bb))))

    Bp = _round_up(B, Bb)
    pad = Bp - B
    grid = (Bp // Bb,)

    if pad:
        qT = jnp.pad(qT, ((0, 0), (0, pad)))
        kT = jnp.pad(kT, ((0, 0), (0, 0), (0, pad)))
        vT = jnp.pad(vT, ((0, 0), (0, 0), (0, pad)))

    inputs = [qT, kT, vT]
    in_specs = [
        pl.BlockSpec((d_k, Bb), lambda i: (0, i)),
        pl.BlockSpec((d_k, T, Bb), lambda i: (0, 0, i)),
        pl.BlockSpec((T, d_v, Bb), lambda i: (0, 0, i)),
    ]
    if has_mask:
        mT = jnp.transpose(mask.reshape(B, T), (1, 0)).astype(jnp.int8)   # (T, B)
        if pad:
            mT = jnp.pad(mT, ((0, 0), (0, pad)))
        inputs.append(mT)
        in_specs.append(pl.BlockSpec((T, Bb), lambda i: (0, i)))

    kernel = functools.partial(
        _sdpa_kernel, temperature=float(temperature), has_mask=has_mask
    )

    out_t, attn_t = pl.pallas_call(
        kernel,
        grid=grid,
        out_shape=(
            jax.ShapeDtypeStruct((d_v, Bp), q.dtype),
            jax.ShapeDtypeStruct((T, Bp), attn_dtype),
        ),
        in_specs=in_specs,
        out_specs=(
            pl.BlockSpec((d_v, Bb), lambda i: (0, i)),
            pl.BlockSpec((T, Bb), lambda i: (0, i)),
        ),
        compiler_params=pltpu.CompilerParams(
            # Batch grid axis is independent: shards across v7x's 2 TensorCores,
            # harmless on single-core v5e/v6e.  (Verify sharding in xprof on v7x;
            # fall back to an explicit size-2 CORE_PARALLEL axis if needed.)
            dimension_semantics=("parallel",),
            vmem_limit_bytes=vmem_limit,
        ),
    )(*inputs)

    # Restore torch output shapes: (B, 1, d_v) and (B, 1, T).
    out = jnp.transpose(out_t[:, :B], (1, 0))[:, None, :]
    attn = jnp.transpose(attn_t[:, :B], (1, 0))[:, None, :]
    return out, attn


def _reference(q, k, v, temperature, mask=None):
    attn = jnp.einsum("bd,btd->bt", q, k)[:, None, :] / temperature
    if mask is not None:
        attn = jnp.where(mask.reshape(attn.shape) != 0, 1e-9, attn)
    attn = jax.nn.softmax(attn, axis=2)
    out = jnp.einsum("bqt,btd->bqd", attn, v)
    return out, attn


if __name__ == "__main__":
    # Small shapes consistent with LTAE usage: (n_head * batch) = 8, seq = 8, d_k = d_v = 32
    B, T, d_k, d_v = 8, 8, 32, 32
    temperature = float(np.sqrt(d_k))

    key = jax.random.PRNGKey(0)
    kq, kk, kv, km = jax.random.split(key, 4)
    q = jax.random.normal(kq, (B, d_k), dtype=jnp.float32)
    k = jax.random.normal(kk, (B, T, d_k), dtype=jnp.float32)
    v = jax.random.normal(kv, (B, T, d_v), dtype=jnp.float32)
    mask = (jax.random.uniform(km, (B, 1, T)) < 0.25).astype(jnp.float32)

    # No-mask path (mask specialized out statically).
    out, attn = scaled_dot_product_attention(q, k, v, temperature, mask=None)
    jax.block_until_ready((out, attn))
    ref_out, ref_attn = _reference(q, k, v, temperature, mask=None)
    assert out.shape == (B, 1, d_v) and attn.shape == (B, 1, T)
    np.testing.assert_allclose(np.asarray(out), np.asarray(ref_out), rtol=2e-4, atol=2e-5)
    np.testing.assert_allclose(np.asarray(attn), np.asarray(ref_attn), rtol=2e-4, atol=2e-5)

    # Masked path (int8 (T, B) mask block).
    out_m, attn_m = scaled_dot_product_attention(q, k, v, temperature, mask=mask)
    jax.block_until_ready((out_m, attn_m))
    ref_out_m, ref_attn_m = _reference(q, k, v, temperature, mask=mask)
    np.testing.assert_allclose(np.asarray(out_m), np.asarray(ref_out_m), rtol=2e-4, atol=2e-5)
    np.testing.assert_allclose(np.asarray(attn_m), np.asarray(ref_attn_m), rtol=2e-4, atol=2e-5)

    print("KERNEL_OK")
</pallas_src>

<mosaic_0001>
module attributes {stable_mosaic.version = 11 : i64} {
  func.func @_sdpa_kernel(%arg0: i32, %arg1: memref<32x128xf32, #tpu.memory_space<vmem>>, %arg2: memref<32x8x128xf32, #tpu.memory_space<vmem>>, %arg3: memref<8x32x128xf32, #tpu.memory_space<vmem>>, %arg4: memref<32x128xf32, #tpu.memory_space<vmem>>, %arg5: memref<8x128xf32, #tpu.memory_space<vmem>>) attributes {dimension_semantics = [#tpu.dimension_semantics<parallel>], iteration_bounds = array<i64: 1>, scalar_prefetch = 0 : i64, scratch_operands = 0 : i64, tpu.core_type = #tpu.core_type<tc>, window_params = [{transform_indices = @transform_0, window_bounds = array<i64: 32, 128>}, {transform_indices = @transform_1, window_bounds = array<i64: 32, 8, 128>}, {transform_indices = @transform_2, window_bounds = array<i64: 8, 32, 128>}, {transform_indices = @transform_3, window_bounds = array<i64: 32, 128>}, {transform_indices = @transform_4, window_bounds = array<i64: 8, 128>}]} {
    %c0 = arith.constant 0 : index
    %c0_0 = arith.constant 0 : index
    %0 = vector.load %arg1[%c0, %c0_0] : memref<32x128xf32, #tpu.memory_space<vmem>>, vector<32x128xf32>
    %cst = arith.constant 0.176776692 : f32
    %1 = vector.broadcast %cst : f32 to vector<32x128xf32>
    %2 = arith.mulf %0, %1 : vector<32x128xf32>
    %cst_1 = arith.constant 0.000000e+00 : f32
    %3 = vector.broadcast %cst_1 : f32 to vector<8x128xf32>
    %4 = vector.extract_strided_slice %2 {offsets = [0, 0], sizes = [1, 128], strides = [1, 1]} : vector<32x128xf32> to vector<1x128xf32>
    %c0_2 = arith.constant 0 : index
    %c0_3 = arith.constant 0 : index
    %c0_4 = arith.constant 0 : index
    %5 = vector.load %arg2[%c0_2, %c0_3, %c0_4] : memref<32x8x128xf32, #tpu.memory_space<vmem>>, vector<1x8x128xf32>
    %6 = vector.shape_cast %5 : vector<1x8x128xf32> to vector<8x128xf32>
    %7 = vector.broadcast %4 : vector<1x128xf32> to vector<8x128xf32>
    %8 = arith.mulf %7, %6 : vector<8x128xf32>
    %9 = arith.addf %3, %8 : vector<8x128xf32>
    %10 = vector.extract_strided_slice %2 {offsets = [1, 0], sizes = [1, 128], strides = [1, 1]} : vector<32x128xf32> to vector<1x128xf32>
    %c1 = arith.constant 1 : index
    %c0_5 = arith.constant 0 : index
    %c0_6 = arith.constant 0 : index
    %11 = vector.load %arg2[%c1, %c0_5, %c0_6] : memref<32x8x128xf32, #tpu.memory_space<vmem>>, vector<1x8x128xf32>
    %12 = vector.shape_cast %11 : vector<1x8x128xf32> to vector<8x128xf32>
    %13 = vector.broadcast %10 : vector<1x128xf32> to vector<8x128xf32>
    %14 = arith.mulf %13, %12 : vector<8x128xf32>
    %15 = arith.addf %9, %14 : vector<8x128xf32>
    %16 = vector.extract_strided_slice %2 {offsets = [2, 0], sizes = [1, 128], strides = [1, 1]} : vector<32x128xf32> to vector<1x128xf32>
    %c2 = arith.constant 2 : index
    %c0_7 = arith.constant 0 : index
    %c0_8 = arith.constant 0 : index
    %17 = vector.load %arg2[%c2, %c0_7, %c0_8] : memref<32x8x128xf32, #tpu.memory_space<vmem>>, vector<1x8x128xf32>
    %18 = vector.shape_cast %17 : vector<1x8x128xf32> to vector<8x128xf32>
    %19 = vector.broadcast %16 : vector<1x128xf32> to vector<8x128xf32>
    %20 = arith.mulf %19, %18 : vector<8x128xf32>
    %21 = arith.addf %15, %20 : vector<8x128xf32>
    %22 = vector.extract_strided_slice %2 {offsets = [3, 0], sizes = [1, 128], strides = [1, 1]} : vector<32x128xf32> to vector<1x128xf32>
    %c3 = arith.constant 3 : index
    %c0_9 = arith.constant 0 : index
    %c0_10 = arith.constant 0 : index
    %23 = vector.load %arg2[%c3, %c0_9, %c0_10] : memref<32x8x128xf32, #tpu.memory_space<vmem>>, vector<1x8x128xf32>
    %24 = vector.shape_cast %23 : vector<1x8x128xf32> to vector<8x128xf32>
    %25 = vector.broadcast %22 : vector<1x128xf32> to vector<8x128xf32>
    %26 = arith.mulf %25, %24 : vector<8x128xf32>
    %27 = arith.addf %21, %26 : vector<8x128xf32>
    %28 = vector.extract_strided_slice %2 {offsets = [4, 0], sizes = [1, 128], strides = [1, 1]} : vector<32x128xf32> to vector<1x128xf32>
    %c4 = arith.constant 4 : index
    %c0_11 = arith.constant 0 : index
    %c0_12 = arith.constant 0 : index
    %29 = vector.load %arg2[%c4, %c0_11, %c0_12] : memref<32x8x128xf32, #tpu.memory_space<vmem>>, vector<1x8x128xf32>
    %30 = vector.shape_cast %29 : vector<1x8x128xf32> to vector<8x128xf32>
    %31 = vector.broadcast %28 : vector<1x128xf32> to vector<8x128xf32>
    %32 = arith.mulf %31, %30 : vector<8x128xf32>
    %33 = arith.addf %27, %32 : vector<8x128xf32>
    %34 = vector.extract_strided_slice %2 {offsets = [5, 0], sizes = [1, 128], strides = [1, 1]} : vector<32x128xf32> to vector<1x128xf32>
    %c5 = arith.constant 5 : index
    %c0_13 = arith.constant 0 : index
    %c0_14 = arith.constant 0 : index
    %35 = vector.load %arg2[%c5, %c0_13, %c0_14] : memref<32x8x128xf32, #tpu.memory_space<vmem>>, vector<1x8x128xf32>
    %36 = vector.shape_cast %35 : vector<1x8x128xf32> to vector<8x128xf32>
    %37 = vector.broadcast %34 : vector<1x128xf32> to vector<8x128xf32>
    %38 = arith.mulf %37, %36 : vector<8x128xf32>
    %39 = arith.addf %33, %38 : vector<8x128xf32>
    %40 = vector.extract_strided_slice %2 {offsets = [6, 0], sizes = [1, 128], strides = [1, 1]} : vector<32x128xf32> to vector<1x128xf32>
    %c6 = arith.constant 6 : index
    %c0_15 = arith.constant 0 : index
    %c0_16 = arith.constant 0 : index
    %41 = vector.load %arg2[%c6, %c0_15, %c0_16] : memref<32x8x128xf32, #tpu.memory_space<vmem>>, vector<1x8x128xf32>
    %42 = vector.shape_cast %41 : vector<1x8x128xf32> to vector<8x128xf32>
    %43 = vector.broadcast %40 : vector<1x128xf32> to vector<8x128xf32>
    %44 = arith.mulf %43, %42 : vector<8x128xf32>
    %45 = arith.addf %39, %44 : vector<8x128xf32>
    %46 = vector.extract_strided_slice %2 {offsets = [7, 0], sizes = [1, 128], strides = [1, 1]} : vector<32x128xf32> to vector<1x128xf32>
    %c7 = arith.constant 7 : index
    %c0_17 = arith.constant 0 : index
    %c0_18 = arith.constant 0 : index
    %47 = vector.load %arg2[%c7, %c0_17, %c0_18] : memref<32x8x128xf32, #tpu.memory_space<vmem>>, vector<1x8x128xf32>
    %48 = vector.shape_cast %47 : vector<1x8x128xf32> to vector<8x128xf32>
    %49 = vector.broadcast %46 : vector<1x128xf32> to vector<8x128xf32>
    %50 = arith.mulf %49, %48 : vector<8x128xf32>
    %51 = arith.addf %45, %50 : vector<8x128xf32>
    %52 = vector.extract_strided_slice %2 {offsets = [8, 0], sizes = [1, 128], strides = [1, 1]} : vector<32x128xf32> to vector<1x128xf32>
    %c8 = arith.constant 8 : index
    %c0_19 = arith.constant 0 : index
    %c0_20 = arith.constant 0 : index
    %53 = vector.load %arg2[%c8, %c0_19, %c0_20] : memref<32x8x128xf32, #tpu.memory_space<vmem>>, vector<1x8x128xf32>
    %54 = vector.shape_cast %53 : vector<1x8x128xf32> to vector<8x128xf32>
    %55 = vector.broadcast %52 : vector<1x128xf32> to vector<8x128xf32>
    %56 = arith.mulf %55, %54 : vector<8x128xf32>
    %57 = arith.addf %51, %56 : vector<8x128xf32>
    %58 = vector.extract_strided_slice %2 {offsets = [9, 0], sizes = [1, 128], strides = [1, 1]} : vector<32x128xf32> to vector<1x128xf32>
    %c9 = arith.constant 9 : index
    %c0_21 = arith.constant 0 : index
    %c0_22 = arith.constant 0 : index
    %59 = vector.load %arg2[%c9, %c0_21, %c0_22] : memref<32x8x128xf32, #tpu.memory_space<vmem>>, vector<1x8x128xf32>
    %60 = vector.shape_cast %59 : vector<1x8x128xf32> to vector<8x128xf32>
    %61 = vector.broadcast %58 : vector<1x128xf32> to vector<8x128xf32>
    %62 = arith.mulf %61, %60 : vector<8x128xf32>
    %63 = arith.addf %57, %62 : vector<8x128xf32>
    %64 = vector.extract_strided_slice %2 {offsets = [10, 0], sizes = [1, 128], strides = [1, 1]} : vector<32x128xf32> to vector<1x128xf32>
    %c10 = arith.constant 10 : index
    %c0_23 = arith.constant 0 : index
    %c0_24 = arith.constant 0 : index
    %65 = vector.load %arg2[%c10, %c0_23, %c0_24] : memref<32x8x128xf32, #tpu.memory_space<vmem>>, vector<1x8x128xf32>
    %66 = vector.shape_cast %65 : vector<1x8x128xf32> to vector<8x128xf32>
    %67 = vector.broadcast %64 : vector<1x128xf32> to vector<8x128xf32>
    %68 = arith.mulf %67, %66 : vector<8x128xf32>
    %69 = arith.addf %63, %68 : vector<8x128xf32>
    %70 = vector.extract_strided_slice %2 {offsets = [11, 0], sizes = [1, 128], strides = [1, 1]} : vector<32x128xf32> to vector<1x128xf32>
    %c11 = arith.constant 11 : index
    %c0_25 = arith.constant 0 : index
    %c0_26 = arith.constant 0 : index
    %71 = vector.load %arg2[%c11, %c0_25, %c0_26] : memref<32x8x128xf32, #tpu.memory_space<vmem>>, vector<1x8x128xf32>
    %72 = vector.shape_cast %71 : vector<1x8x128xf32> to vector<8x128xf32>
    %73 = vector.broadcast %70 : vector<1x128xf32> to vector<8x128xf32>
    %74 = arith.mulf %73, %72 : vector<8x128xf32>
    %75 = arith.addf %69, %74 : vector<8x128xf32>
    %76 = vector.extract_strided_slice %2 {offsets = [12, 0], sizes = [1, 128], strides = [1, 1]} : vector<32x128xf32> to vector<1x128xf32>
    %c12 = arith.constant 12 : index
    %c0_27 = arith.constant 0 : index
    %c0_28 = arith.constant 0 : index
    %77 = vector.load %arg2[%c12, %c0_27, %c0_28] : memref<32x8x128xf32, #tpu.memory_space<vmem>>, vector<1x8x128xf32>
    %78 = vector.shape_cast %77 : vector<1x8x128xf32> to vector<8x128xf32>
    %79 = vector.broadcast %76 : vector<1x128xf32> to vector<8x128xf32>
    %80 = arith.mulf %79, %78 : vector<8x128xf32>
    %81 = arith.addf %75, %80 : vector<8x128xf32>
    %82 = vector.extract_strided_slice %2 {offsets = [13, 0], sizes = [1, 128], strides = [1, 1]} : vector<32x128xf32> to vector<1x128xf32>
    %c13 = arith.constant 13 : index
    %c0_29 = arith.constant 0 : index
    %c0_30 = arith.constant 0 : index
    %83 = vector.load %arg2[%c13, %c0_29, %c0_30] : memref<32x8x128xf32, #tpu.memory_space<vmem>>, vector<1x8x128xf32>
    %84 = vector.shape_cast %83 : vector<1x8x128xf32> to vector<8x128xf32>
    %85 = vector.broadcast %82 : vector<1x128xf32> to vector<8x128xf32>
    %86 = arith.mulf %85, %84 : vector<8x128xf32>
    %87 = arith.addf %81, %86 : vector<8x128xf32>
    %88 = vector.extract_strided_slice %2 {offsets = [14, 0], sizes = [1, 128], strides = [1, 1]} : vector<32x128xf32> to vector<1x128xf32>
    %c14 = arith.constant 14 : index
    %c0_31 = arith.constant 0 : index
    %c0_32 = arith.constant 0 : index
    %89 = vector.load %arg2[%c14, %c0_31, %c0_32] : memref<32x8x128xf32, #tpu.memory_space<vmem>>, vector<1x8x128xf32>
    %90 = vector.shape_cast %89 : vector<1x8x128xf32> to vector<8x128xf32>
    %91 = vector.broadcast %88 : vector<1x128xf32> to vector<8x128xf32>
    %92 = arith.mulf %91, %90 : vector<8x128xf32>
    %93 = arith.addf %87, %92 : vector<8x128xf32>
    %94 = vector.extract_strided_slice %2 {offsets = [15, 0], sizes = [1, 128], strides = [1, 1]} : vector<32x128xf32> to vector<1x128xf32>
    %c15 = arith.constant 15 : index
    %c0_33 = arith.constant 0 : index
    %c0_34 = arith.constant 0 : index
    %95 = vector.load %arg2[%c15, %c0_33, %c0_34] : memref<32x8x128xf32, #tpu.memory_space<vmem>>, vector<1x8x128xf32>
    %96 = vector.shape_cast %95 : vector<1x8x128xf32> to vector<8x128xf32>
    %97 = vector.broadcast %94 : vector<1x128xf32> to vector<8x128xf32>
    %98 = arith.mulf %97, %96 : vector<8x128xf32>
    %99 = arith.addf %93, %98 : vector<8x128xf32>
    %100 = vector.extract_strided_slice %2 {offsets = [16, 0], sizes = [1, 128], strides = [1, 1]} : vector<32x128xf32> to vector<1x128xf32>
    %c16 = arith.constant 16 : index
    %c0_35 = arith.constant 0 : index
    %c0_36 = arith.constant 0 : index
    %101 = vector.load %arg2[%c16, %c0_35, %c0_36] : memref<32x8x128xf32, #tpu.memory_space<vmem>>, vector<1x8x128xf32>
    %102 = vector.shape_cast %101 : vector<1x8x128xf32> to vector<8x128xf32>
    %103 = vector.broadcast %100 : vector<1x128xf32> to vector<8x128xf32>
    %104 = arith.mulf %103, %102 : vector<8x128xf32>
    %105 = arith.addf %99, %104 : vector<8x128xf32>
    %106 = vector.extract_strided_slice %2 {offsets = [17, 0], sizes = [1, 128], strides = [1, 1]} : vector<32x128xf32> to vector<1x128xf32>
    %c17 = arith.constant 17 : index
    %c0_37 = arith.constant 0 : index
    %c0_38 = arith.constant 0 : index
    %107 = vector.load %arg2[%c17, %c0_37, %c0_38] : memref<32x8x128xf32, #tpu.memory_space<vmem>>, vector<1x8x128xf32>
    %108 = vector.shape_cast %107 : vector<1x8x128xf32> to vector<8x128xf32>
    %109 = vector.broadcast %106 : vector<1x128xf32> to vector<8x128xf32>
    %110 = arith.mulf %109, %108 : vector<8x128xf32>
    %111 = arith.addf %105, %110 : vector<8x128xf32>
    %112 = vector.extract_strided_slice %2 {offsets = [18, 0], sizes = [1, 128], strides = [1, 1]} : vector<32x128xf32> to vector<1x128xf32>
    %c18 = arith.constant 18 : index
    %c0_39 = arith.constant 0 : index
    %c0_40 = arith.constant 0 : index
    %113 = vector.load %arg2[%c18, %c0_39, %c0_40] : memref<32x8x128xf32, #tpu.memory_space<vmem>>, vector<1x8x128xf32>
    %114 = vector.shape_cast %113 : vector<1x8x128xf32> to vector<8x128xf32>
    %115 = vector.broadcast %112 : vector<1x128xf32> to vector<8x128xf32>
    %116 = arith.mulf %115, %114 : vector<8x128xf32>
    %117 = arith.addf %111, %116 : vector<8x128xf32>
    %118 = vector.extract_strided_slice %2 {offsets = [19, 0], sizes = [1, 128], strides = [1, 1]} : vector<32x128xf32> to vector<1x128xf32>
    %c19 = arith.constant 19 : index
    %c0_41 = arith.constant 0 : index
    %c0_42 = arith.constant 0 : index
    %119 = vector.load %arg2[%c19, %c0_41, %c0_42] : memref<32x8x128xf32, #tpu.memory_space<vmem>>, vector<1x8x128xf32>
    %120 = vector.shape_cast %119 : vector<1x8x128xf32> to vector<8x128xf32>
    %121 = vector.broadcast %118 : vector<1x128xf32> to vector<8x128xf32>
    %122 = arith.mulf %121, %120 : vector<8x128xf32>
    %123 = arith.addf %117, %122 : vector<8x128xf32>
    %124 = vector.extract_strided_slice %2 {offsets = [20, 0], sizes = [1, 128], strides = [1, 1]} : vector<32x128xf32> to vector<1x128xf32>
    %c20 = arith.constant 20 : index
    %c0_43 = arith.constant 0 : index
    %c0_44 = arith.constant 0 : index
    %125 = vector.load %arg2[%c20, %c0_43, %c0_44] : memref<32x8x128xf32, #tpu.memory_space<vmem>>, vector<1x8x128xf32>
    %126 = vector.shape_cast %125 : vector<1x8x128xf32> to vector<8x128xf32>
    %127 = vector.broadcast %124 : vector<1x128xf32> to vector<8x128xf32>
    %128 = arith.mulf %127, %126 : vector<8x128xf32>
    %129 = arith.addf %123, %128 : vector<8x128xf32>
    %130 = vector.extract_strided_slice %2 {offsets = [21, 0], sizes = [1, 128], strides = [1, 1]} : vector<32x128xf32> to vector<1x128xf32>
    %c21 = arith.constant 21 : index
    %c0_45 = arith.constant 0 : index
    %c0_46 = arith.constant 0 : index
    %131 = vector.load %arg2[%c21, %c0_45, %c0_46] : memref<32x8x128xf32, #tpu.memory_space<vmem>>, vector<1x8x128xf32>
    %132 = vector.shape_cast %131 : vector<1x8x128xf32> to vector<8x128xf32>
    %133 = vector.broadcast %130 : vector<1x128xf32> to vector<8x128xf32>
    %134 = arith.mulf %133, %132 : vector<8x128xf32>
    %135 = arith.addf %129, %134 : vector<8x128xf32>
    %136 = vector.extract_strided_slice %2 {offsets = [22, 0], sizes = [1, 128], strides = [1, 1]} : vector<32x128xf32> to vector<1x128xf32>
    %c22 = arith.constant 22 : index
    %c0_47 = arith.constant 0 : index
    %c0_48 = arith.constant 0 : index
    %137 = vector.load %arg2[%c22, %c0_47, %c0_48] : memref<32x8x128xf32, #tpu.memory_space<vmem>>, vector<1x8x128xf32>
    %138 = vector.shape_cast %137 : vector<1x8x128xf32> to vector<8x128xf32>
    %139 = vector.broadcast %136 : vector<1x128xf32> to vector<8x128xf32>
    %140 = arith.mulf %139, %138 : vector<8x128xf32>
    %141 = arith.addf %135, %140 : vector<8x128xf32>
    %142 = vector.extract_strided_slice %2 {offsets = [23, 0], sizes = [1, 128], strides = [1, 1]} : vector<32x128xf32> to vector<1x128xf32>
    %c23 = arith.constant 23 : index
    %c0_49 = arith.constant 0 : index
    %c0_50 = arith.constant 0 : index
    %143 = vector.load %arg2[%c23, %c0_49, %c0_50] : memref<32x8x128xf32, #tpu.memory_space<vmem>>, vector<1x8x128xf32>
    %144 = vector.shape_cast %143 : vector<1x8x128xf32> to vector<8x128xf32>
    %145 = vector.broadcast %142 : vector<1x128xf32> to vector<8x128xf32>
    %146 = arith.mulf %145, %144 : vector<8x128xf32>
    %147 = arith.addf %141, %146 : vector<8x128xf32>
    %148 = vector.extract_strided_slice %2 {offsets = [24, 0], sizes = [1, 128], strides = [1, 1]} : vector<32x128xf32> to vector<1x128xf32>
    %c24 = arith.constant 24 : index
    %c0_51 = arith.constant 0 : index
    %c0_52 = arith.constant 0 : index
    %149 = vector.load %arg2[%c24, %c0_51, %c0_52] : memref<32x8x128xf32, #tpu.memory_space<vmem>>, vector<1x8x128xf32>
    %150 = vector.shape_cast %149 : vector<1x8x128xf32> to vector<8x128xf32>
    %151 = vector.broadcast %148 : vector<1x128xf32> to vector<8x128xf32>
    %152 = arith.mulf %151, %150 : vector<8x128xf32>
    %153 = arith.addf %147, %152 : vector<8x128xf32>
    %154 = vector.extract_strided_slice %2 {offsets = [25, 0], sizes = [1, 128], strides = [1, 1]} : vector<32x128xf32> to vector<1x128xf32>
    %c25 = arith.constant 25 : index
    %c0_53 = arith.constant 0 : index
    %c0_54 = arith.constant 0 : index
    %155 = vector.load %arg2[%c25, %c0_53, %c0_54] : memref<32x8x128xf32, #tpu.memory_space<vmem>>, vector<1x8x128xf32>
    %156 = vector.shape_cast %155 : vector<1x8x128xf32> to vector<8x128xf32>
    %157 = vector.broadcast %154 : vector<1x128xf32> to vector<8x128xf32>
    %158 = arith.mulf %157, %156 : vector<8x128xf32>
    %159 = arith.addf %153, %158 : vector<8x128xf32>
    %160 = vector.extract_strided_slice %2 {offsets = [26, 0], sizes = [1, 128], strides = [1, 1]} : vector<32x128xf32> to vector<1x128xf32>
    %c26 = arith.constant 26 : index
    %c0_55 = arith.constant 0 : index
    %c0_56 = arith.constant 0 : index
    %161 = vector.load %arg2[%c26, %c0_55, %c0_56] : memref<32x8x128xf32, #tpu.memory_space<vmem>>, vector<1x8x128xf32>
    %162 = vector.shape_cast %161 : vector<1x8x128xf32> to vector<8x128xf32>
    %163 = vector.broadcast %160 : vector<1x128xf32> to vector<8x128xf32>
    %164 = arith.mulf %163, %162 : vector<8x128xf32>
    %165 = arith.addf %159, %164 : vector<8x128xf32>
    %166 = vector.extract_strided_slice %2 {offsets = [27, 0], sizes = [1, 128], strides = [1, 1]} : vector<32x128xf32> to vector<1x128xf32>
    %c27 = arith.constant 27 : index
    %c0_57 = arith.constant 0 : index
    %c0_58 = arith.constant 0 : index
    %167 = vector.load %arg2[%c27, %c0_57, %c0_58] : memref<32x8x128xf32, #tpu.memory_space<vmem>>, vector<1x8x128xf32>
    %168 = vector.shape_cast %167 : vector<1x8x128xf32> to vector<8x128xf32>
    %169 = vector.broadcast %166 : vector<1x128xf32> to vector<8x128xf32>
    %170 = arith.mulf %169, %168 : vector<8x128xf32>
    %171 = arith.addf %165, %170 : vector<8x128xf32>
    %172 = vector.extract_strided_slice %2 {offsets = [28, 0], sizes = [1, 128], strides = [1, 1]} : vector<32x128xf32> to vector<1x128xf32>
    %c28 = arith.constant 28 : index
    %c0_59 = arith.constant 0 : index
    %c0_60 = arith.constant 0 : index
    %173 = vector.load %arg2[%c28, %c0_59, %c0_60] : memref<32x8x128xf32, #tpu.memory_space<vmem>>, vector<1x8x128xf32>
    %174 = vector.shape_cast %173 : vector<1x8x128xf32> to vector<8x128xf32>
    %175 = vector.broadcast %172 : vector<1x128xf32> to vector<8x128xf32>
    %176 = arith.mulf %175, %174 : vector<8x128xf32>
    %177 = arith.addf %171, %176 : vector<8x128xf32>
    %178 = vector.extract_strided_slice %2 {offsets = [29, 0], sizes = [1, 128], strides = [1, 1]} : vector<32x128xf32> to vector<1x128xf32>
    %c29 = arith.constant 29 : index
    %c0_61 = arith.constant 0 : index
    %c0_62 = arith.constant 0 : index
    %179 = vector.load %arg2[%c29, %c0_61, %c0_62] : memref<32x8x128xf32, #tpu.memory_space<vmem>>, vector<1x8x128xf32>
    %180 = vector.shape_cast %179 : vector<1x8x128xf32> to vector<8x128xf32>
    %181 = vector.broadcast %178 : vector<1x128xf32> to vector<8x128xf32>
    %182 = arith.mulf %181, %180 : vector<8x128xf32>
    %183 = arith.addf %177, %182 : vector<8x128xf32>
    %184 = vector.extract_strided_slice %2 {offsets = [30, 0], sizes = [1, 128], strides = [1, 1]} : vector<32x128xf32> to vector<1x128xf32>
    %c30 = arith.constant 30 : index
    %c0_63 = arith.constant 0 : index
    %c0_64 = arith.constant 0 : index
    %185 = vector.load %arg2[%c30, %c0_63, %c0_64] : memref<32x8x128xf32, #tpu.memory_space<vmem>>, vector<1x8x128xf32>
    %186 = vector.shape_cast %185 : vector<1x8x128xf32> to vector<8x128xf32>
    %187 = vector.broadcast %184 : vector<1x128xf32> to vector<8x128xf32>
    %188 = arith.mulf %187, %186 : vector<8x128xf32>
    %189 = arith.addf %183, %188 : vector<8x128xf32>
    %190 = vector.extract_strided_slice %2 {offsets = [31, 0], sizes = [1, 128], strides = [1, 1]} : vector<32x128xf32> to vector<1x128xf32>
    %c31 = arith.constant 31 : index
    %c0_65 = arith.constant 0 : index
    %c0_66 = arith.constant 0 : index
    %191 = vector.load %arg2[%c31, %c0_65, %c0_66] : memref<32x8x128xf32, #tpu.memory_space<vmem>>, vector<1x8x128xf32>
    %192 = vector.shape_cast %191 : vector<1x8x128xf32> to vector<8x128xf32>
    %193 = vector.broadcast %190 : vector<1x128xf32> to vector<8x128xf32>
    %194 = arith.mulf %193, %192 : vector<8x128xf32>
    %195 = arith.addf %189, %194 : vector<8x128xf32>
    %cst_67 = arith.constant dense<0xFF800000> : vector<128xf32>
    %196 = vector.multi_reduction <maximumf>, %195, %cst_67 [0] : vector<8x128xf32> to vector<128xf32>
    %197 = vector.shape_cast %196 : vector<128xf32> to vector<1x128xf32>
    %198 = vector.broadcast %197 : vector<1x128xf32> to vector<8x128xf32>
    %199 = arith.subf %195, %198 : vector<8x128xf32>
    %200 = math.exp %199 : vector<8x128xf32>
    %cst_68 = arith.constant dense<0.000000e+00> : vector<128xf32>
    %201 = vector.multi_reduction <add>, %200, %cst_68 [0] : vector<8x128xf32> to vector<128xf32>
    %202 = vector.shape_cast %201 : vector<128xf32> to vector<1x128xf32>
    %203 = tpu.reciprocal %202 : vector<1x128xf32> -> vector<1x128xf32>
    %204 = vector.broadcast %203 : vector<1x128xf32> to vector<8x128xf32>
    %205 = arith.mulf %200, %204 : vector<8x128xf32>
    %c0_69 = arith.constant 0 : index
    %c0_70 = arith.constant 0 : index
    %206 = vector.load %arg5[%c0_69, %c0_70] : memref<8x128xf32, #tpu.memory_space<vmem>>, vector<8x128xf32>
    tpu.vector_store %arg5[%c0_69, %c0_70], %205 {strides = array<i32>} : memref<8x128xf32, #tpu.memory_space<vmem>>, vector<8x128xf32>,
    %cst_71 = arith.constant 0.000000e+00 : f32
    %207 = vector.broadcast %cst_71 : f32 to vector<32x128xf32>
    %208 = vector.extract_strided_slice %205 {offsets = [0, 0], sizes = [1, 128], strides = [1, 1]} : vector<8x128xf32> to vector<1x128xf32>
    %c0_72 = arith.constant 0 : index
    %c0_73 = arith.constant 0 : index
    %c0_74 = arith.constant 0 : index
    %209 = vector.load %arg3[%c0_72, %c0_73, %c0_74] : memref<8x32x128xf32, #tpu.memory_space<vmem>>, vector<1x32x128xf32>
    %210 = vector.shape_cast %209 : vector<1x32x128xf32> to vector<32x128xf32>
    %211 = vector.broadcast %208 : vector<1x128xf32> to vector<32x128xf32>
    %212 = arith.mulf %211, %210 : vector<32x128xf32>
    %213 = arith.addf %207, %212 : vector<32x128xf32>
    %214 = vector.extract_strided_slice %205 {offsets = [1, 0], sizes = [1, 128], strides = [1, 1]} : vector<8x128xf32> to vector<1x128xf32>
    %c1_75 = arith.constant 1 : index
    %c0_76 = arith.constant 0 : index
    %c0_77 = arith.constant 0 : index
    %215 = vector.load %arg3[%c1_75, %c0_76, %c0_77] : memref<8x32x128xf32, #tpu.memory_space<vmem>>, vector<1x32x128xf32>
    %216 = vector.shape_cast %215 : vector<1x32x128xf32> to vector<32x128xf32>
    %217 = vector.broadcast %214 : vector<1x128xf32> to vector<32x128xf32>
    %218 = arith.mulf %217, %216 : vector<32x128xf32>
    %219 = arith.addf %213, %218 : vector<32x128xf32>
    %220 = vector.extract_strided_slice %205 {offsets = [2, 0], sizes = [1, 128], strides = [1, 1]} : vector<8x128xf32> to vector<1x128xf32>
    %c2_78 = arith.constant 2 : index
    %c0_79 = arith.constant 0 : index
    %c0_80 = arith.constant 0 : index
    %221 = vector.load %arg3[%c2_78, %c0_79, %c0_80] : memref<8x32x128xf32, #tpu.memory_space<vmem>>, vector<1x32x128xf32>
    %222 = vector.shape_cast %221 : vector<1x32x128xf32> to vector<32x128xf32>
    %223 = vector.broadcast %220 : vector<1x128xf32> to vector<32x128xf32>
    %224 = arith.mulf %223, %222 : vector<32x128xf32>
    %225 = arith.addf %219, %224 : vector<32x128xf32>
    %226 = vector.extract_strided_slice %205 {offsets = [3, 0], sizes = [1, 128], strides = [1, 1]} : vector<8x128xf32> to vector<1x128xf32>
    %c3_81 = arith.constant 3 : index
    %c0_82 = arith.constant 0 : index
    %c0_83 = arith.constant 0 : index
    %227 = vector.load %arg3[%c3_81, %c0_82, %c0_83] : memref<8x32x128xf32, #tpu.memory_space<vmem>>, vector<1x32x128xf32>
    %228 = vector.shape_cast %227 : vector<1x32x128xf32> to vector<32x128xf32>
    %229 = vector.broadcast %226 : vector<1x128xf32> to vector<32x128xf32>
    %230 = arith.mulf %229, %228 : vector<32x128xf32>
    %231 = arith.addf %225, %230 : vector<32x128xf32>
    %232 = vector.extract_strided_slice %205 {offsets = [4, 0], sizes = [1, 128], strides = [1, 1]} : vector<8x128xf32> to vector<1x128xf32>
    %c4_84 = arith.constant 4 : index
    %c0_85 = arith.constant 0 : index
    %c0_86 = arith.constant 0 : index
    %233 = vector.load %arg3[%c4_84, %c0_85, %c0_86] : memref<8x32x128xf32, #tpu.memory_space<vmem>>, vector<1x32x128xf32>
    %234 = vector.shape_cast %233 : vector<1x32x128xf32> to vector<32x128xf32>
    %235 = vector.broadcast %232 : vector<1x128xf32> to vector<32x128xf32>
    %236 = arith.mulf %235, %234 : vector<32x128xf32>
    %237 = arith.addf %231, %236 : vector<32x128xf32>
    %238 = vector.extract_strided_slice %205 {offsets = [5, 0], sizes = [1, 128], strides = [1, 1]} : vector<8x128xf32> to vector<1x128xf32>
    %c5_87 = arith.constant 5 : index
    %c0_88 = arith.constant 0 : index
    %c0_89 = arith.constant 0 : index
    %239 = vector.load %arg3[%c5_87, %c0_88, %c0_89] : memref<8x32x128xf32, #tpu.memory_space<vmem>>, vector<1x32x128xf32>
    %240 = vector.shape_cast %239 : vector<1x32x128xf32> to vector<32x128xf32>
    %241 = vector.broadcast %238 : vector<1x128xf32> to vector<32x128xf32>
    %242 = arith.mulf %241, %240 : vector<32x128xf32>
    %243 = arith.addf %237, %242 : vector<32x128xf32>
    %244 = vector.extract_strided_slice %205 {offsets = [6, 0], sizes = [1, 128], strides = [1, 1]} : vector<8x128xf32> to vector<1x128xf32>
    %c6_90 = arith.constant 6 : index
    %c0_91 = arith.constant 0 : index
    %c0_92 = arith.constant 0 : index
    %245 = vector.load %arg3[%c6_90, %c0_91, %c0_92] : memref<8x32x128xf32, #tpu.memory_space<vmem>>, vector<1x32x128xf32>
    %246 = vector.shape_cast %245 : vector<1x32x128xf32> to vector<32x128xf32>
    %247 = vector.broadcast %244 : vector<1x128xf32> to vector<32x128xf32>
    %248 = arith.mulf %247, %246 : vector<32x128xf32>
    %249 = arith.addf %243, %248 : vector<32x128xf32>
    %250 = vector.extract_strided_slice %205 {offsets = [7, 0], sizes = [1, 128], strides = [1, 1]} : vector<8x128xf32> to vector<1x128xf32>
    %c7_93 = arith.constant 7 : index
    %c0_94 = arith.constant 0 : index
    %c0_95 = arith.constant 0 : index
    %251 = vector.load %arg3[%c7_93, %c0_94, %c0_95] : memref<8x32x128xf32, #tpu.memory_space<vmem>>, vector<1x32x128xf32>
    %252 = vector.shape_cast %251 : vector<1x32x128xf32> to vector<32x128xf32>
    %253 = vector.broadcast %250 : vector<1x128xf32> to vector<32x128xf32>
    %254 = arith.mulf %253, %252 : vector<32x128xf32>
    %255 = arith.addf %249, %254 : vector<32x128xf32>
    %c0_96 = arith.constant 0 : index
    %c0_97 = arith.constant 0 : index
    %256 = vector.load %arg4[%c0_96, %c0_97] : memref<32x128xf32, #tpu.memory_space<vmem>>, vector<32x128xf32>
    tpu.vector_store %arg4[%c0_96, %c0_97], %255 {strides = array<i32>} : memref<32x128xf32, #tpu.memory_space<vmem>>, vector<32x128xf32>,
    return
  }
  func.func @transform_0(%arg0: i32) -> (i32, i32) {
    %c0_i32 = arith.constant 0 : i32
    %c0_i32_0 = arith.constant 0 : i32
    return %c0_i32, %arg0 : i32, i32
  }
  func.func @transform_1(%arg0: i32) -> (i32, i32, i32) {
    %c0_i32 = arith.constant 0 : i32
    %c0_i32_0 = arith.constant 0 : i32
    %c0_i32_1 = arith.constant 0 : i32
    return %c0_i32, %c0_i32_0, %arg0 : i32, i32, i32
  }
  func.func @transform_2(%arg0: i32) -> (i32, i32, i32) {
    %c0_i32 = arith.constant 0 : i32
    %c0_i32_0 = arith.constant 0 : i32
    %c0_i32_1 = arith.constant 0 : i32
    return %c0_i32, %c0_i32_0, %arg0 : i32, i32, i32
  }
  func.func @transform_3(%arg0: i32) -> (i32, i32) {
    %c0_i32 = arith.constant 0 : i32
    %c0_i32_0 = arith.constant 0 : i32
    return %c0_i32, %arg0 : i32, i32
  }
  func.func @transform_4(%arg0: i32) -> (i32, i32) {
    %c0_i32 = arith.constant 0 : i32
    %c0_i32_0 = arith.constant 0 : i32
    return %c0_i32, %arg0 : i32, i32
  }
}

</mosaic_0001>

<bundles_post_ra>
// kernel: tpu_custom_call.1
= control target key start
LH: loop header
LB: loop body
LE: loop exit
PB: predicated region body
PF: predicated region fallthrough
CT: control target
= control target key end

     0   :  { %10 = vsyncpa [#allocation3], 0  ;;  %s849_s0 = inlined_call_operand.hbm [shape: f32[32,128], index: 0, kind: input, shape index: {}]   ;;  %s850_s1 = inlined_call_operand.hbm [shape: f32[32,8,128], index: 1, kind: input, shape index: {}]   ;;  %s851_s2 = inlined_call_operand.hbm [shape: f32[8,32,128], index: 2, kind: input, shape index: {}]   ;;  %s852_s3 = inlined_call_operand.hbm [shape: f32[32,128], index: 3, kind: output, shape index: {0}]   ;;  %s853_s4 = inlined_call_operand.hbm [shape: f32[8,128], index: 4, kind: output, shape index: {1}]  }
   0x1   :  { %11 = vsyncpa [#allocation6], 0 }
   0x2   :  { %12 = vsyncpa [#allocation4], 0 }
   0x3   :  { %13 = vsyncpa [#allocation10], 0  ;;  %s640_s15 = smov [#allocation5]   ;;  %s641_s17 = smov [#allocation2]  }
   0x4   :  { %s31_s16 = sshll.u32 %s640_s15, 4  ;;  %s19_s18 = sshll.u32 %s641_s17, 4  ;;  %s32_s16 = int_to_ptr.vmem [resolvable:$true] %s31_s16  ;;  %s672_s18 = int_to_ptr.vmem [resolvable:$true] %s19_s18 }
   0x5   :  { %s522_s21 = scalar_lea.hbm %s850_s1, 4096 }
   0x6   :  { %p523_p0 = scmp.ne.s32.totalorder %s850_s1, %s522_s21  ;;  %p526_p1 = scmp.lt.u32.totalorder %s522_s21, %s850_s1 }
   0x8   :  { %p528_p2 = pnand %p526_p1, %p523_p0 }
   0xa   :  { %531 = shalt.err (!%p528_p2)
}
   0xb   :  { %s532_s26 = scalar_lea.vmem %s32_s16, 4096  ;;  %p537_p4 = scmp.lt.s32.totalorder %s32_s16, %s32_s16 }
   0xc   :  { %p533_p3 = scmp.ne.s32.totalorder %s32_s16, %s532_s26  ;;  %p538_p5 = scmp.lt.s32.totalorder %s532_s26, %s532_s26 }
   0xe   :  { %p539_p6 = por %p538_p5, %p537_p4 }
  0x10   :  { %p540_p7 = pnand %p539_p6, %p533_p3 }
  0x12   :  { %543 = shalt.err (!%p540_p7)
}
  0x13   :  { %s642_s27 = smov 128   ;;  %s643_s28 = smov 8  }
  0x14   :  { %37 = dma.hbm_to_vmem [thread:$0]  %s850_s1, 4096, %s32_s16, [#allocation6], %s642_s27, %s642_s27, %s643_s28  }
  0x15   :  { %s544_s7 = scalar_lea.hbm %s849_s0, 512 }
  0x16   :  { %p545_p8 = scmp.ne.s32.totalorder %s849_s0, %s544_s7  ;;  %p548_p9 = scmp.lt.u32.totalorder %s544_s7, %s849_s0 }
  0x18   :  { %p550_p10 = pnand %p548_p9, %p545_p8 }
  0x1a   :  { %553 = shalt.err (!%p550_p10)
}
  0x1b   :  { %s554_s12 = scalar_lea.vmem %s672_s18, 512  ;;  %p559_p12 = scmp.lt.s32.totalorder %s672_s18, %s672_s18 }
  0x1c   :  { %p555_p11 = scmp.ne.s32.totalorder %s672_s18, %s554_s12  ;;  %p560_p13 = scmp.lt.s32.totalorder %s554_s12, %s554_s12 }
  0x1e   :  { %p561_p0 = por %p560_p13, %p559_p12 }
  0x20   :  { %p562_p1 = pnand %p561_p0, %p555_p11 }
  0x22   :  { %565 = shalt.err (!%p562_p1)
}
  0x23   :  { %25 = dma.hbm_to_vmem [thread:$0]  %s849_s0, 512, %s672_s18, [#allocation3], %s642_s27, %s642_s27, %s643_s28  }
  0x24   :  { %s644_s14 = smov [#allocation7]   ;;  %s566_s19 = scalar_lea.hbm %s851_s2, 4096 }
  0x25   :  { %s43_s15 = sshll.u32 %s644_s14, 4  ;;  %p567_p2 = scmp.ne.s32.totalorder %s851_s2, %s566_s19  ;;  %s44_s15 = int_to_ptr.vmem [resolvable:$true] %s43_s15 }
  0x26   :  { %p570_p3 = scmp.lt.u32.totalorder %s566_s19, %s851_s2 }
  0x28   :  { %p572_p4 = pnand %p570_p3, %p567_p2 }
  0x2a   :  { %575 = shalt.err (!%p572_p4)
}
  0x2b   :  { %s576_s24 = scalar_lea.vmem %s44_s15, 4096  ;;  %p581_p6 = scmp.lt.s32.totalorder %s44_s15, %s44_s15 }
  0x2c   :  { %p577_p5 = scmp.ne.s32.totalorder %s44_s15, %s576_s24  ;;  %p582_p7 = scmp.lt.s32.totalorder %s576_s24, %s576_s24 }
  0x2e   :  { %p583_p8 = por %p582_p7, %p581_p6 }
  0x30   :  { %p584_p9 = pnand %p583_p8, %p577_p5 }
  0x32   :  { %587 = shalt.err (!%p584_p9)
}
  0x33   :  { %49 = dma.hbm_to_vmem [thread:$0]  %s851_s2, 4096, %s44_s15, [#allocation6], %s642_s27, %s642_s27, %s643_s28  }
  0x34   :  { %632 = dma.done.wait [#allocation3], 512  }
  0x35   :  { %633 = vsyncadd [#allocation3], 4294966784 }
  0x36   :  { %634 = dma.done.wait [#allocation6], 8192  }
  0x37   :  { %635 = vsyncadd [#allocation6], 4294959104  ;;  %v68_v0 = vlaneseq  ;;  %v59_v6 = vld [vmem:[#allocation2] sm:$0xff]  ;;  %v75_v10 = vld [vmem:[#allocation5 + $0x8] sm:$0xff]  ;;  %s645_s2 = smov [#allocation9]  }
  0x38   :  { %v63_v7 = vmul.f32 0.17677669, %v59_v6  ;;  %v67_v9 = vld [vmem:[#allocation5] sm:$0xff]  ;;  %v83_v11 = vld [vmem:[#allocation5 + $0x10] sm:$0xff]  ;;  %v91_v17 = vld [vmem:[#allocation5 + $0x18] sm:$0xff]  ;;  %s497_s25 = sshll.u32 %s645_s2, 4  ;;  %s498_s25 = int_to_ptr.vmem [resolvable:$true] %s497_s25 }
  0x39   :  { %v69_v1 = vshrl.u32 %v68_v0, 7  ;;  %v60_v23 = vld [vmem:[#allocation2 + $0x8] sm:$0xff]  ;;  %v99_v24 = vld [vmem:[#allocation5 + $0x20] sm:$0xff]  ;;  %v115_v34 = vld [vmem:[#allocation5 + $0x30] sm:$0xff]  ;;  %s588_s26 = scalar_lea.vmem %s498_s25, 128  ;;  %p593_p11 = scmp.lt.s32.totalorder %s498_s25, %s498_s25 }
  0x3a   :  { %v107_v29 = vld [vmem:[#allocation5 + $0x28] sm:$0xff]  ;;  %v64_v30 = vmul.f32 0.17677669, %v60_v23  ;;  %v123_v38 = vld [vmem:[#allocation5 + $0x38] sm:$0xff]  ;;  %v131_v42 = vld [vmem:[#allocation5 + $0x40] sm:$0xff]  ;;  %p589_p10 = scmp.ne.s32.totalorder %s498_s25, %s588_s26  ;;  %p594_p12 = scmp.lt.s32.totalorder %s588_s26, %s588_s26 }
  0x3b   :  { %v724_v2 = vsub.s32 0, %v69_v1  ;;  %v726_v3 = vsub.s32 1, %v69_v1  ;;  %v728_v4 = vsub.s32 2, %v69_v1  ;;  %v730_v5 = vsub.s32 3, %v69_v1  ;;  %v139_v46 = vld [vmem:[#allocation5 + $0x48] sm:$0xff]  ;;  %v147_v50 = vld [vmem:[#allocation5 + $0x50] sm:$0xff] }
  0x3c   :  { %v732_v8 = vsub.s32 4, %v69_v1  ;;  %v734_v12 = vsub.s32 5, %v69_v1  ;;  %v740_v18 = vsub.s32 6, %v69_v1  ;;  %v744_v28 = vsub.s32 7, %v69_v1  ;;  %v155_v54 = vld [vmem:[#allocation5 + $0x58] sm:$0xff]  ;;  %v61_v58 = vld [vmem:[#allocation2 + $0x10] sm:$0xff]  ;;  %p595_p13 = por %p594_p12, %p593_p11 }
  0x3d   :  { %v71_v13 = vrot.slane %v63_v7, %v724_v2  ;;  %v79_v14 = vrot.slane %v63_v7, %v726_v3  ;;  %v87_v15 = vrot.slane %v63_v7, %v728_v4  ;;  %v95_v16 = vrot.slane %v63_v7, %v730_v5  ;;  %v163_v59 = vld [vmem:[#allocation5 + $0x60] sm:$0xff]  ;;  %v171_v63 = vld [vmem:[#allocation5 + $0x68] sm:$0xff] }
  0x3e   :  { %v103_v22 = vrot.slane %v63_v7, %v732_v8  ;;  %v111_v27 = vrot.slane %v63_v7, %v734_v12  ;;  %v119_v33 = vrot.slane %v63_v7, %v740_v18  ;;  %v127_v37 = vrot.slane %v63_v7, %v744_v28  ;;  %v203_v23 = vld [vmem:[#allocation5 + $0x88] sm:$0xff]  ;;  %p596_p0 = pnand %p595_p13, %p589_p10 }
  0x3f   :  { %v72_v19 = vmul.f32 %v71_v13, %v67_v9  ;;  %v80_v20 = vmul.f32 %v79_v14, %v75_v10  ;;  %v88_v21 = vmul.f32 %v87_v15, %v83_v11  ;;  %v96_v26 = vmul.f32 %v95_v16, %v91_v17  ;;  %v179_v9 = vld [vmem:[#allocation5 + $0x70] sm:$0xff]  ;;  %v187_v14 = vld [vmem:[#allocation5 + $0x78] sm:$0xff] }
  0x40   :  { %v104_v32 = vmul.f32 %v103_v22, %v99_v24  ;;  %v112_v36 = vmul.f32 %v111_v27, %v107_v29  ;;  %v120_v40 = vmul.f32 %v119_v33, %v115_v34  ;;  %v135_v41 = vrot.slane %v64_v30, %v724_v2  ;;  %v211_v27 = vld [vmem:[#allocation5 + $0x90] sm:$0xff] }
  0x41   :  { %v81_v25 = vadd.f32 %v80_v20, %v72_v19  ;;  %v128_v44 = vmul.f32 %v127_v37, %v123_v38  ;;  %v143_v45 = vrot.slane %v64_v30, %v726_v3  ;;  %v151_v49 = vrot.slane %v64_v30, %v728_v4  ;;  %v195_v19 = vld [vmem:[#allocation5 + $0x80] sm:$0xff] }
  0x42   :  { %v136_v48 = vmul.f32 %v135_v41, %v131_v42  ;;  %v159_v53 = vrot.slane %v64_v30, %v730_v5  ;;  %v167_v57 = vrot.slane %v64_v30, %v732_v8  ;;  %v175_v62 = vrot.slane %v64_v30, %v734_v12  ;;  %v227_v37 = vld [vmem:[#allocation5 + $0xa0] sm:$0xff]  ;;  %v235_v41 = vld [vmem:[#allocation5 + $0xa8] sm:$0xff] }
  0x43   :  { %v89_v31 = vadd.f32 %v88_v21, %v81_v25  ;;  %v144_v52 = vmul.f32 %v143_v45, %v139_v46  ;;  %v152_v56 = vmul.f32 %v151_v49, %v147_v50  ;;  %v65_v0 = vmul.f32 0.17677669, %v61_v58  ;;  %v243_v46 = vld [vmem:[#allocation5 + $0xb0] sm:$0xff]  ;;  %v251_v50 = vld [vmem:[#allocation5 + $0xb8] sm:$0xff]  ;;  %v267_v58 = vld [vmem:[#allocation5 + $0xc8] sm:$0xff] }
  0x44   :  { %v160_v61 = vmul.f32 %v159_v53, %v155_v54  ;;  %v168_v6 = vmul.f32 %v167_v57, %v163_v59  ;;  %v183_v7 = vrot.slane %v64_v30, %v740_v18  ;;  %v176_v11 = vmul.f32 %v175_v62, %v171_v63  ;;  %v259_v54 = vld [vmem:[#allocation5 + $0xc0] sm:$0xff]  ;;  %v275_v62 = vld [vmem:[#allocation5 + $0xd0] sm:$0xff] }
  0x45   :  { %v97_v35 = vadd.f32 %v96_v26, %v89_v31  ;;  %v191_v13 = vrot.slane %v64_v30, %v744_v28  ;;  %v199_v17 = vrot.slane %v65_v0, %v724_v2  ;;  %v207_v22 = vrot.slane %v65_v0, %v726_v3 }
  0x46   :  { %v184_v16 = vmul.f32 %v183_v7, %v179_v9  ;;  %v215_v26 = vrot.slane %v65_v0, %v728_v4  ;;  %v223_v30 = vrot.slane %v65_v0, %v730_v5  ;;  %v247_v45 = vrot.slane %v65_v0, %v740_v18 }
  0x47   :  { %v105_v39 = vadd.f32 %v104_v32, %v97_v35  ;;  %v192_v21 = vmul.f32 %v191_v13, %v187_v14  ;;  %v200_v25 = vmul.f32 %v199_v17, %v195_v19  ;;  %v208_v31 = vmul.f32 %v207_v22, %v203_v23  ;;  %v219_v32 = vld [vmem:[#allocation5 + $0x98] sm:$0xff] }
  0x48   :  { %v216_v34 = vmul.f32 %v215_v26, %v211_v27  ;;  %v231_v35 = vrot.slane %v65_v0, %v732_v8  ;;  %v255_v49 = vrot.slane %v65_v0, %v744_v28 }
  0x49   :  { %v113_v43 = vadd.f32 %v112_v36, %v105_v39  ;;  %v62_v36 = vld [vmem:[#allocation2 + $0x18] sm:$0xff]  ;;  %v224_v39 = vmul.f32 %v223_v30, %v219_v32 }
  0x4a   :  { %v66_v42 = vmul.f32 0.17677669, %v62_v36 }
  0x4b   :  { %v121_v47 = vadd.f32 %v120_v40, %v113_v43  ;;  %v239_v40 = vrot.slane %v65_v0, %v734_v12 }
  0x4c   :  { %v263_v53 = vrot.slane %v66_v42, %v724_v2  ;;  %v271_v57 = vrot.slane %v66_v42, %v726_v3  ;;  %v287_v0 = vrot.slane %v66_v42, %v730_v5 }
  0x4d   :  { %v129_v51 = vadd.f32 %v128_v44, %v121_v47  ;;  %v232_v44 = vmul.f32 %v231_v35, %v227_v37 }
  0x4f   :  { %v137_v55 = vadd.f32 %v136_v48, %v129_v51  ;;  %v240_v48 = vmul.f32 %v239_v40, %v235_v41 }
  0x51   :  { %v145_v60 = vadd.f32 %v144_v52, %v137_v55  ;;  %v248_v52 = vmul.f32 %v247_v45, %v243_v46 }
  0x53   :  { %v153_v1 = vadd.f32 %v152_v56, %v145_v60  ;;  %v256_v56 = vmul.f32 %v255_v49, %v251_v50  ;;  %v264_v60 = vmul.f32 %v263_v53, %v259_v54  ;;  %v340_v50 = vld [vmem:[#allocation7] sm:$0xff] }
  0x55   :  { %v161_v10 = vadd.f32 %v160_v61, %v153_v1  ;;  %v279_v61 = vrot.slane %v66_v42, %v728_v4  ;;  %v272_v1 = vmul.f32 %v271_v57, %v267_v58 }
  0x57   :  { %v169_v15 = vadd.f32 %v168_v6, %v161_v10  ;;  %v283_v6 = vld [vmem:[#allocation5 + $0xd8] sm:$0xff]  ;;  %v280_v9 = vmul.f32 %v279_v61, %v275_v62  ;;  %v295_v10 = vrot.slane %v66_v42, %v732_v8  ;;  %v375_v61 = vld [vmem:[#allocation7 + $0x48] sm:$0xff] }
  0x58   :  { %v288_v14 = vmul.f32 %v287_v0, %v283_v6 }
  0x59   :  { %v177_v20 = vadd.f32 %v176_v11, %v169_v15  ;;  %v291_v11 = vld [vmem:[#allocation5 + $0xe0] sm:$0xff]  ;;  %v303_v15 = vrot.slane %v66_v42, %v734_v12 }
  0x5a   :  { %v296_v19 = vmul.f32 %v295_v10, %v291_v11 }
  0x5b   :  { %v185_v24 = vadd.f32 %v184_v16, %v177_v20  ;;  %v299_v16 = vld [vmem:[#allocation5 + $0xe8] sm:$0xff]  ;;  %v311_v20 = vrot.slane %v66_v42, %v740_v18 }
  0x5c   :  { %v304_v23 = vmul.f32 %v303_v15, %v299_v16 }
  0x5d   :  { %v193_v29 = vadd.f32 %v192_v21, %v185_v24  ;;  %v307_v21 = vld [vmem:[#allocation5 + $0xf0] sm:$0xff]  ;;  %v319_v24 = vrot.slane %v66_v42, %v744_v28 }
  0x5e   :  { %v312_v27 = vmul.f32 %v311_v20, %v307_v21 }
  0x5f   :  { %v201_v33 = vadd.f32 %v200_v25, %v193_v29  ;;  %v315_v25 = vld [vmem:[#allocation5 + $0xf8] sm:$0xff] }
  0x61   :  { %v209_v38 = vadd.f32 %v208_v31, %v201_v33  ;;  %v320_v31 = vmul.f32 %v319_v24, %v315_v25 }
  0x63   :  { %v217_v43 = vadd.f32 %v216_v34, %v209_v38 }
  0x65   :  { %v225_v47 = vadd.f32 %v224_v39, %v217_v43 }
  0x67   :  { %v233_v51 = vadd.f32 %v232_v44, %v225_v47 }
  0x69   :  { %v241_v55 = vadd.f32 %v240_v48, %v233_v51  ;;  %v357_v51 = vld [vmem:[#allocation7 + $0x20] sm:$0xff] }
  0x6b   :  { %v249_v59 = vadd.f32 %v248_v52, %v241_v55  ;;  %v374_v52 = vld [vmem:[#allocation7 + $0x40] sm:$0xff] }
  0x6d   :  { %v257_v63 = vadd.f32 %v256_v56, %v249_v59  ;;  %v391_v56 = vld [vmem:[#allocation7 + $0x60] sm:$0xff]  ;;  %v341_v59 = vld [vmem:[#allocation7 + $0x8] sm:$0xff] }
  0x6f   :  { %v265_v7 = vadd.f32 %v264_v60, %v257_v63  ;;  %v358_v60 = vld [vmem:[#allocation7 + $0x28] sm:$0xff] }
  0x71   :  { %v273_v13 = vadd.f32 %v272_v1, %v265_v7 }
  0x73   :  { %v281_v17 = vadd.f32 %v280_v9, %v273_v13 }
  0x75   :  { %v289_v22 = vadd.f32 %v288_v14, %v281_v17 }
  0x77   :  { %v297_v26 = vadd.f32 %v296_v19, %v289_v22 }
  0x79   :  { %v305_v29 = vadd.f32 %v304_v23, %v297_v26 }
  0x7b   :  { %v313_v30 = vadd.f32 %v312_v27, %v305_v29 }
  0x7d   :  { %v321_v32 = vadd.f32 %v320_v31, %v313_v30 }
  0x7f   :  { %v322_v33 = vrot.slane %v321_v32, 4 }
  0x81   :  { %v323_v34 = vmax.f32 %v321_v32, %v322_v33 }
  0x83   :  { %v324_v35 = vrot.slane %v323_v34, 2 }
  0x85   :  { %v325_v36 = vmax.f32 %v323_v34, %v324_v35 }
  0x87   :  { %v326_v37 = vrot.slane %v325_v36, 1 }
  0x89   :  { %v327_v38 = vmax.f32 %v325_v36, %v326_v37 }
  0x8b   :  { %v328_v39 = vsub.f32 %v321_v32, %v327_v38 }
  0x8d   :  { %v329_v40 = vmul.f32 1.442695, %v328_v39 }
  0x8f   :  { %518 = vpow2.f32 %v329_v40 }
  0x99   :  { %v519_v41 = vpop.eup %518 }
  0x9a   :  { %v331_v43 = vrot.slane %v519_v41, 4 }
  0x9c   :  { %v332_v44 = vadd.f32 %v519_v41, %v331_v43 }
  0x9e   :  { %v333_v42 = vrot.slane %v332_v44, 2 }
  0xa0   :  { %v334_v45 = vadd.f32 %v333_v42, %v332_v44 }
  0xa2   :  { %v335_v46 = vrot.slane %v334_v45, 1 }
  0xa4   :  { %v336_v47 = vadd.f32 %v335_v46, %v334_v45 }
  0xa6   :  { %520 = vrcp.f32 %v336_v47 }
  0xb0   :  { %v521_v48 = vpop.eup %520 }
  0xb1   :  { %v338_v49 = vmul.f32 %v521_v48, %v519_v41 }
  0xb3   :  { %339 = vst [vmem:[#allocation9] sm:$0xff] %v338_v49  ;;  %v773_v53 = vrot.slane %v338_v49, %v724_v2  ;;  %v776_v54 = vrot.slane %v338_v49, %v726_v3  ;;  %v779_v55 = vrot.slane %v338_v49, %v728_v4  ;;  %v782_v57 = vrot.slane %v338_v49, %v730_v5 }
  0xb4   :  { %v785_v58 = vrot.slane %v338_v49, %v732_v8 }
  0xb5   :  { %599 = shalt.err (!%p596_p0)
}
  0xb6   :  { %s600_s5 = scalar_lea.hbm %s853_s4, 128 }
  0xb7   :  { %p601_p1 = scmp.ne.s32.totalorder %s853_s4, %s600_s5  ;;  %p604_p2 = scmp.lt.u32.totalorder %s600_s5, %s853_s4 }
  0xb9   :  { %p606_p3 = pnand %p604_p2, %p601_p1 }
  0xbb   :  { %609 = shalt.err (!%p606_p3)
}
  0xbc   :  { %500 = dma.vmem_to_hbm [thread:$0]  %s498_s25, 128, %s853_s4, [#allocation10]   ;;  %v348_v2 = vmul.f32 %v773_v53, %v340_v50  ;;  %v365_v3 = vmul.f32 %v776_v54, %v357_v51  ;;  %v382_v4 = vmul.f32 %v779_v55, %v374_v52  ;;  %v408_v5 = vld [vmem:[#allocation7 + $0x80] sm:$0xff]  ;;  %v399_v8 = vmul.f32 %v782_v57, %v391_v56  ;;  %v392_v1 = vld [vmem:[#allocation7 + $0x68] sm:$0xff]  ;;  %v342_v0 = vld [vmem:[#allocation7 + $0x10] sm:$0xff] }
  0xbd   :  { %v804_v62 = vrot.slane %v338_v49, %v734_v12  ;;  %v807_v63 = vrot.slane %v338_v49, %v740_v18  ;;  %v425_v7 = vld [vmem:[#allocation7 + $0xa0] sm:$0xff]  ;;  %v349_v9 = vmul.f32 %v773_v53, %v341_v59  ;;  %v366_v10 = vmul.f32 %v776_v54, %v358_v60  ;;  %v359_v13 = vld [vmem:[#allocation7 + $0x30] sm:$0xff]  ;;  %v409_v12 = vld [vmem:[#allocation7 + $0x88] sm:$0xff]  ;;  %s646_s4 = smov [#allocation8]  }
  0xbe   :  { %v369_v6 = vadd.f32 %v365_v3, %v348_v2  ;;  %v383_v11 = vmul.f32 %v779_v55, %v375_v61  ;;  %v376_v14 = vld [vmem:[#allocation7 + $0x50] sm:$0xff]  ;;  %v416_v15 = vmul.f32 %v785_v58, %v408_v5  ;;  %v442_v16 = vld [vmem:[#allocation7 + $0xc0] sm:$0xff]  ;;  %v400_v18 = vmul.f32 %v782_v57, %v392_v1  ;;  %v343_v22 = vld [vmem:[#allocation7 + $0x18] sm:$0xff]  ;;  %s484_s12 = sshll.u32 %s646_s4, 4  ;;  %s485_s12 = int_to_ptr.vmem [resolvable:$true] %s484_s12 }
  0xbf   :  { %v370_v19 = vadd.f32 %v366_v10, %v349_v9  ;;  %v350_v20 = vmul.f32 %v773_v53, %v342_v0  ;;  %v393_v21 = vld [vmem:[#allocation7 + $0x70] sm:$0xff]  ;;  %v360_v23 = vld [vmem:[#allocation7 + $0x38] sm:$0xff]  ;;  %v433_v24 = vmul.f32 %v804_v62, %v425_v7  ;;  %v466_v25 = vrot.slane %v338_v49, %v744_v28  ;;  %v426_v26 = vld [vmem:[#allocation7 + $0xa8] sm:$0xff]  ;;  %s610_s1 = scalar_lea.vmem %s485_s12, 512  ;;  %p615_p5 = scmp.lt.s32.totalorder %s485_s12, %s485_s12 }
  0xc0   :  { %v386_v17 = vadd.f32 %v382_v4, %v369_v6  ;;  %v367_v27 = vmul.f32 %v776_v54, %v359_v13  ;;  %v384_v29 = vmul.f32 %v779_v55, %v376_v14  ;;  %v377_v31 = vld [vmem:[#allocation7 + $0x58] sm:$0xff]  ;;  %v450_v32 = vmul.f32 %v807_v63, %v442_v16  ;;  %v410_v35 = vld [vmem:[#allocation7 + $0x90] sm:$0xff]  ;;  %v459_v37 = vld [vmem:[#allocation7 + $0xe0] sm:$0xff]  ;;  %p611_p4 = scmp.ne.s32.totalorder %s485_s12, %s610_s1  ;;  %p616_p6 = scmp.lt.s32.totalorder %s610_s1, %s610_s1 }
  0xc1   :  { %v387_v33 = vadd.f32 %v383_v11, %v370_v19  ;;  %v417_v34 = vmul.f32 %v785_v58, %v409_v12  ;;  %v394_v36 = vld [vmem:[#allocation7 + $0x78] sm:$0xff]  ;;  %v443_v38 = vld [vmem:[#allocation7 + $0xc8] sm:$0xff]  ;;  %v401_v40 = vmul.f32 %v782_v57, %v393_v21  ;;  %v351_v28 = vmul.f32 %v773_v53, %v343_v22  ;;  %v427_v45 = vld [vmem:[#allocation7 + $0xb0] sm:$0xff] }
  0xc2   :  { %v403_v30 = vadd.f32 %v399_v8, %v386_v17  ;;  %v371_v39 = vadd.f32 %v367_v27, %v350_v20  ;;  %v368_v41 = vmul.f32 %v776_v54, %v360_v23  ;;  %v434_v42 = vmul.f32 %v804_v62, %v426_v26  ;;  %v411_v47 = vld [vmem:[#allocation7 + $0x98] sm:$0xff]  ;;  %v460_v48 = vld [vmem:[#allocation7 + $0xe8] sm:$0xff]  ;;  %v444_v60 = vld [vmem:[#allocation7 + $0xd0] sm:$0xff]  ;;  %p617_p7 = por %p616_p6, %p615_p5 }
  0xc3   :  { %v404_v44 = vadd.f32 %v400_v18, %v387_v33  ;;  %v385_v46 = vmul.f32 %v779_v55, %v377_v31  ;;  %v418_v50 = vmul.f32 %v785_v58, %v410_v35  ;;  %v402_v52 = vmul.f32 %v782_v57, %v394_v36  ;;  %v428_v61 = vld [vmem:[#allocation7 + $0xb8] sm:$0xff]  ;;  %v461_v0 = vld [vmem:[#allocation7 + $0xf0] sm:$0xff] }
  0xc4   :  { %v420_v43 = vadd.f32 %v416_v15, %v403_v30  ;;  %v388_v49 = vadd.f32 %v384_v29, %v371_v39  ;;  %v372_v51 = vadd.f32 %v368_v41, %v351_v28  ;;  %v467_v59 = vmul.f32 %v466_v25, %v459_v37  ;;  %v445_v6 = vld [vmem:[#allocation7 + $0xd8] sm:$0xff]  ;;  %p618_p8 = pnand %p617_p7, %p611_p4 }
  0xc5   :  { %v421_v53 = vadd.f32 %v417_v34, %v404_v44  ;;  %v451_v54 = vmul.f32 %v807_v63, %v443_v38  ;;  %v435_v3 = vmul.f32 %v804_v62, %v427_v45  ;;  %v419_v55 = vmul.f32 %v785_v58, %v411_v47  ;;  %v462_v14 = vld [vmem:[#allocation7 + $0xf8] sm:$0xff] }
  0xc6   :  { %v437_v56 = vadd.f32 %v433_v24, %v420_v43  ;;  %v405_v2 = vadd.f32 %v401_v40, %v388_v49  ;;  %v389_v4 = vadd.f32 %v385_v46, %v372_v51  ;;  %v468_v1 = vmul.f32 %v466_v25, %v460_v48 }
  0xc7   :  { %v438_v8 = vadd.f32 %v434_v42, %v421_v53  ;;  %v452_v57 = vmul.f32 %v807_v63, %v444_v60  ;;  %v436_v10 = vmul.f32 %v804_v62, %v428_v61  ;;  %v469_v16 = vmul.f32 %v466_v25, %v461_v0 }
  0xc8   :  { %v454_v5 = vadd.f32 %v450_v32, %v437_v56  ;;  %v422_v7 = vadd.f32 %v418_v50, %v405_v2  ;;  %v406_v9 = vadd.f32 %v402_v52, %v389_v4  ;;  %v453_v17 = vmul.f32 %v807_v63, %v445_v6 }
  0xc9   :  { %v455_v13 = vadd.f32 %v451_v54, %v438_v8  ;;  %v470_v20 = vmul.f32 %v466_v25, %v462_v14 }
  0xca   :  { %v471_v11 = vadd.f32 %v467_v59, %v454_v5  ;;  %v439_v15 = vadd.f32 %v435_v3, %v422_v7  ;;  %v423_v12 = vadd.f32 %v419_v55, %v406_v9 }
  0xcb   :  { %v472_v58 = vadd.f32 %v468_v1, %v455_v13 }
  0xcc   :  { %475 = vst [vmem:[#allocation8] sm:$0xff] %v471_v11  ;;  %v456_v19 = vadd.f32 %v452_v57, %v439_v15  ;;  %v440_v18 = vadd.f32 %v436_v10, %v423_v12 }
  0xcd   :  { %476 = vst [vmem:[#allocation8 + $0x8] sm:$0xff] %v472_v58 }
  0xce   :  { %v473_v21 = vadd.f32 %v469_v16, %v456_v19  ;;  %v457_v22 = vadd.f32 %v453_v17, %v440_v18 }
  0xd0   :  { %477 = vst [vmem:[#allocation8 + $0x10] sm:$0xff] %v473_v21  ;;  %v474_v62 = vadd.f32 %v470_v20, %v457_v22 }
  0xd2   :  { %478 = vst [vmem:[#allocation8 + $0x18] sm:$0xff] %v474_v62 }
  0xd3   :  { %621 = shalt.err (!%p618_p8)
}
  0xd4   :  { %s622_s15 = scalar_lea.hbm %s852_s3, 512 }
  0xd5   :  { %p623_p9 = scmp.ne.s32.totalorder %s852_s3, %s622_s15  ;;  %p626_p10 = scmp.lt.u32.totalorder %s622_s15, %s852_s3 }
  0xd7   :  { %p628_p11 = pnand %p626_p10, %p623_p9 }
  0xd9   :  { %631 = shalt.err (!%p628_p11)
}
  0xda   :  { %490 = dma.vmem_to_hbm [thread:$0]  %s485_s12, 512, %s852_s3, [#allocation4], %s642_s27, %s642_s27, %s643_s28  }
  0xdb   :  { %636 = dma.done.wait [#allocation4], 512  }
  0xdc   :  { %637 = vsyncadd [#allocation4], 4294966784 }
  0xdd   :  { %638 = dma.done.wait [#allocation10], 128  }
  0xde   :  { %639 = vsyncadd [#allocation10], 4294967168 }
  0xdf   :  { %507 = vsyncpa [#allocation3], 1 }
  0xe0   :  { %508 = vsyncpa [#allocation6], 1 }
  0xe1   :  { %509 = vsyncpa [#allocation4], 1 }
  0xe2   :  { %510 = vsyncpa [#allocation10], 1 }

</bundles_post_ra>
